<compile_context>
chip_gen: v7x
topology: tpu7x:2x2x1
jax: 0.10.0
libtpu: 0.0.40
codegen_flags: <defaults>
</compile_context>

<pallas_src>
import numpy as np
import jax
import jax.numpy as jnp
from jax.experimental import pallas as pl
from jax.experimental.pallas import tpu as pltpu

_LANE = 128
_TARGET_BLOCK_BYTES = 4 << 20  # ~4 MiB x-blocks; near HBM roofline on all gens.


def _drop_path_kernel(scale_ref, x_ref, o_ref):
    """Blocks: scale (TR, 1) f32, x/o (TR, C) native dtype."""
    o_ref[...] = x_ref[...] * scale_ref[...].astype(o_ref.dtype)


def _divisors(n: int):
    small, large = [], []
    i = 1
    while i * i <= n:
        if n % i == 0:
            small.append(i)
            if i != n // i:
                large.append(n // i)
        i += 1
    return small + large[::-1]


def _sublane_multiple(itemsize: int) -> int:
    # f32 -> 8, bf16/fp16 -> 16, int8/fp8 -> 32 (packed sublanes).
    return max(8, 32 // itemsize)


def _best_row_tile(total_rows: int, max_rows: int, sub: int) -> int:
    """Largest divisor of total_rows that is <= max_rows and a multiple of `sub`
    (preferred) or of 8 (fallback). Returns 0 if none."""
    best_pref, best_ok = 0, 0
    for tr in _divisors(total_rows):
        if tr > max_rows:
            continue
        if tr % sub == 0 and tr > best_pref:
            best_pref = tr
        if tr % 8 == 0 and tr > best_ok:
            best_ok = tr
    return best_pref if best_pref else best_ok


def drop_path_pallas(x, drop_prob: float = 0.0, training: bool = False, seed: int = 0):
    """JAX/Pallas equivalent of drop_path(x, drop_prob, training)."""
    if drop_prob == 0.0 or not training:
        return x
    keep_prob = 1.0 - drop_prob

    orig_shape = x.shape
    orig_dtype = x.dtype
    B = x.shape[0]
    F = int(np.prod(orig_shape[1:])) if x.ndim > 1 else 1
    itemsize = x.dtype.itemsize
    sub = _sublane_multiple(itemsize)

    # Per-sample scale = floor(keep_prob + U[0,1)) / keep_prob  (f32, 0 or 1/kp).
    # NOTE: callers must thread distinct seeds across layers/steps.
    u = jax.random.uniform(jax.random.PRNGKey(seed), (B,), dtype=jnp.float32)
    sample_scale = jnp.floor(keep_prob + u) * jnp.float32(1.0 / keep_prob)  # (B,)

    x2 = x.reshape(B, F)

    # Lane width C: largest 128-multiple divisor of F (pad F up to 128 if needed
    # so stores are never masked), capped so a block can always hold >= `sub` rows.
    if F % _LANE != 0:
        Fw = ((F + _LANE - 1) // _LANE) * _LANE
        x2 = jnp.pad(x2, ((0, 0), (0, Fw - F)))
    else:
        Fw = F
    lane_cap = max(_LANE, _TARGET_BLOCK_BYTES // (2 * sub * itemsize))
    C = _LANE
    for d in _divisors(Fw // _LANE):
        c = _LANE * d
        if c <= lane_cap and c > C:
            C = c
    R = Fw // C
    total_rows = B * R

    # Per-row scale column (total_rows, 1): sample b's scale repeated R times.
    row_scale = jnp.repeat(sample_scale, R).reshape(total_rows, 1)
    x_rows = x2.reshape(total_rows, C)

    # Row tile: batch-spanning, ~_TARGET_BLOCK_BYTES per x-block.
    row_bytes = C * itemsize
    scale_row_vmem = _LANE * 4  # (TR,1) f32 pads to 128 lanes in VMEM
    max_rows_per_block = max(1, _TARGET_BLOCK_BYTES // (row_bytes + scale_row_vmem))

    pad_rows = 0
    rows = total_rows
    if rows <= max_rows_per_block:
        TR = rows                                     # full extent, always legal
    else:
        TR = _best_row_tile(rows, max_rows_per_block, sub)
        if TR == 0:
            # No suitable divisor: pad the row dim up to a multiple of `sub`.
            pad_rows = (-rows) % sub
            rows += pad_rows
            x_rows = jnp.pad(x_rows, ((0, pad_rows), (0, 0)))
            row_scale = jnp.pad(row_scale, ((0, pad_rows), (0, 0)))
            TR = _best_row_tile(rows, max_rows_per_block, sub)
            assert TR > 0, "row-tile selection failed"

    grid = (rows // TR,)

    # VMEM budget: double-buffered x-in + out blocks + padded scale column.
    block_bytes = TR * row_bytes
    scale_vmem = ((TR + 7) // 8) * 8 * scale_row_vmem
    vmem_needed = 2 * (2 * block_bytes + scale_vmem) + (4 << 20)
    vmem_limit = int(min(60 << 20, max(16 << 20, vmem_needed)))

    out = pl.pallas_call(
        _drop_path_kernel,
        out_shape=jax.ShapeDtypeStruct((rows, C), orig_dtype),
        grid=grid,
        in_specs=[
            pl.BlockSpec((TR, 1), lambda i: (i, 0)),   # per-row scale column
            pl.BlockSpec((TR, C), lambda i: (i, 0)),   # x rows
        ],
        out_specs=pl.BlockSpec((TR, C), lambda i: (i, 0)),
        compiler_params=pltpu.CompilerParams(
            dimension_semantics=("parallel",),
            vmem_limit_bytes=vmem_limit,
        ),
    )(row_scale, x_rows)

    if pad_rows:
        out = out[:total_rows]
    out = out.reshape(B, Fw)
    if Fw != F:
        out = out[:, :F]
    return out.reshape(orig_shape)


class DropPath:
    """Mirror of the PyTorch nn.Module (no learnable parameters)."""

    def __init__(self, drop_prob=None):
        self.drop_prob = drop_prob
        self.training = True

    def __call__(self, x, seed: int = 0):
        return drop_path_pallas(x, self.drop_prob or 0.0, self.training, seed)


def _ref_drop_path(x, keep_prob, seed):
    """Pure-JAX reference using the same per-sample mask as the kernel wrapper."""
    u = jax.random.uniform(jax.random.PRNGKey(seed), (x.shape[0],), dtype=jnp.float32)
    mask = jnp.floor(keep_prob + u)
    bshape = (x.shape[0],) + (1,) * (x.ndim - 1)
    return x.astype(jnp.float32) / keep_prob * mask.reshape(bshape)


if __name__ == "__main__":
    drop_prob = 0.3
    keep_prob = 1.0 - drop_prob
    module = DropPath(drop_prob)

    # ---- test 1: small f32 NCHW, single-block path ----
    x = jax.random.normal(jax.random.PRNGKey(0), (2, 4, 16, 16), dtype=jnp.float32)
    module.training = True
    out = jax.block_until_ready(module(x, seed=123))
    ref = _ref_drop_path(x, keep_prob, 123)
    assert np.allclose(np.asarray(out), np.asarray(ref), rtol=1e-5, atol=1e-5)

    # Each sample is either fully dropped (0) or scaled by 1/keep_prob.
    out_np, x_np = np.asarray(out), np.asarray(x)
    for b in range(x_np.shape[0]):
        dropped = np.allclose(out_np[b], 0.0)
        kept = np.allclose(out_np[b], x_np[b] / keep_prob, rtol=1e-5, atol=1e-5)
        assert dropped or kept, f"sample {b}: not a valid drop-path output"

    # ---- test 2: eval mode is identity ----
    module.training = False
    out_eval = jax.block_until_ready(module(x))
    assert np.allclose(np.asarray(out_eval), np.asarray(x))
    module.training = True

    # ---- test 3: feature count not a multiple of 128 (pad-to-128 path) ----
    x2 = jax.random.normal(jax.random.PRNGKey(1), (2, 3, 5, 7), dtype=jnp.float32)
    out2 = jax.block_until_ready(module(x2, seed=7))
    ref2 = _ref_drop_path(x2, keep_prob, 7)
    assert np.allclose(np.asarray(out2), np.asarray(ref2), rtol=1e-5, atol=1e-5)

    # ---- test 4: bigger batch -> multi-block, batch-spanning row tiles ----
    x3 = jax.random.normal(jax.random.PRNGKey(2), (64, 8, 64, 64), dtype=jnp.float32)
    out3 = jax.block_until_ready(module(x3, seed=42))
    ref3 = _ref_drop_path(x3, keep_prob, 42)
    assert np.allclose(np.asarray(out3), np.asarray(ref3), rtol=1e-5, atol=1e-5)

    # ---- test 5: bf16 activations (native-dtype multiply) ----
    x4 = jax.random.normal(jax.random.PRNGKey(3), (2, 4, 16, 16)).astype(jnp.bfloat16)
    out4 = jax.block_until_ready(module(x4, seed=5))
    ref4 = _ref_drop_path(x4, keep_prob, 5)
    assert np.allclose(np.asarray(out4, dtype=np.float32), np.asarray(ref4),
                       rtol=5e-2, atol=1e-2)

    print("KERNEL_OK")
</pallas_src>

<mosaic_0001>
module attributes {stable_mosaic.version = 11 : i64} {
  func.func @_drop_path_kernel(%arg0: i32, %arg1: memref<2x1xf32, #tpu.memory_space<vmem>>, %arg2: memref<2x1024xf32, #tpu.memory_space<vmem>>, %arg3: memref<2x1024xf32, #tpu.memory_space<vmem>>) attributes {dimension_semantics = [#tpu.dimension_semantics<parallel>], iteration_bounds = array<i64: 1>, scalar_prefetch = 0 : i64, scratch_operands = 0 : i64, tpu.core_type = #tpu.core_type<tc>, window_params = [{transform_indices = @transform_0, window_bounds = array<i64: 2, 1>}, {transform_indices = @transform_1, window_bounds = array<i64: 2, 1024>}, {transform_indices = @transform_2, window_bounds = array<i64: 2, 1024>}]} {
    %c0 = arith.constant 0 : index
    %c0_0 = arith.constant 0 : index
    %0 = vector.load %arg2[%c0, %c0_0] : memref<2x1024xf32, #tpu.memory_space<vmem>>, vector<2x1024xf32>
    %c0_1 = arith.constant 0 : index
    %c0_2 = arith.constant 0 : index
    %1 = vector.load %arg1[%c0_1, %c0_2] : memref<2x1xf32, #tpu.memory_space<vmem>>, vector<2x1xf32>
    %2 = vector.broadcast %1 : vector<2x1xf32> to vector<2x1024xf32>
    %3 = arith.mulf %0, %2 : vector<2x1024xf32>
    %c0_3 = arith.constant 0 : index
    %c0_4 = arith.constant 0 : index
    %4 = vector.load %arg3[%c0_3, %c0_4] : memref<2x1024xf32, #tpu.memory_space<vmem>>, vector<2x1024xf32>
    tpu.vector_store %arg3[%c0_3, %c0_4], %3 {strides = array<i32>} : memref<2x1024xf32, #tpu.memory_space<vmem>>, vector<2x1024xf32>,
    return
  }
  func.func @transform_0(%arg0: i32) -> (i32, i32) {
    %c0_i32 = arith.constant 0 : i32
    %c0_i32_0 = arith.constant 0 : i32
    return %arg0, %c0_i32 : i32, i32
  }
  func.func @transform_1(%arg0: i32) -> (i32, i32) {
    %c0_i32 = arith.constant 0 : i32
    %c0_i32_0 = arith.constant 0 : i32
    return %arg0, %c0_i32 : i32, i32
  }
  func.func @transform_2(%arg0: i32) -> (i32, i32) {
    %c0_i32 = arith.constant 0 : i32
    %c0_i32_0 = arith.constant 0 : i32
    return %arg0, %c0_i32 : i32, i32
  }
}

</mosaic_0001>

<bundles_post_ra>
// kernel: tpu_custom_call.1
= control target key start
LH: loop header
LB: loop body
LE: loop exit
PB: predicated region body
PF: predicated region fallthrough
CT: control target
= control target key end

     0   :  { %7 = vsyncpa [#allocation3], 0  ;;  %s157_s0 = inlined_call_operand.vmem [shape: f32[2,1], index: 0, kind: input, shape index: {}]   ;;  %s158_s1 = inlined_call_operand.hbm [shape: f32[2,1024], index: 1, kind: input, shape index: {}]   ;;  %s159_s2 = inlined_call_operand.hbm [shape: f32[2,1024], index: 2, kind: output, shape index: {}]  }
   0x1   :  { %8 = vsyncpa [#allocation4], 0  ;;  %s111_s9 = smov [#allocation2]   ;;  %s63_s13 = scalar_lea.hbm %s158_s1, 256 }
   0x2   :  { %s17_s10 = sshll.u32 %s111_s9, 4  ;;  %p64_p0 = scmp.ne.s32.totalorder %s158_s1, %s63_s13  ;;  %s18_s10 = int_to_ptr.vmem [resolvable:$true] %s17_s10 }
   0x3   :  { %p67_p1 = scmp.lt.u32.totalorder %s63_s13, %s158_s1 }
   0x5   :  { %p69_p2 = pnand %p67_p1, %p64_p0 }
   0x7   :  { %72 = shalt.err (!%p69_p2)
}
   0x8   :  { %s73_s18 = scalar_lea.vmem %s18_s10, 256  ;;  %p78_p4 = scmp.lt.s32.totalorder %s18_s10, %s18_s10 }
   0x9   :  { %p74_p3 = scmp.ne.s32.totalorder %s18_s10, %s73_s18  ;;  %p79_p5 = scmp.lt.s32.totalorder %s73_s18, %s73_s18 }
   0xb   :  { %p80_p6 = por %p79_p5, %p78_p4 }
   0xd   :  { %p81_p7 = pnand %p80_p6, %p74_p3 }
   0xf   :  { %84 = shalt.err (!%p81_p7)
}
  0x10   :  { %20 = dma.hbm_to_vmem [thread:$0]  %s158_s1, 256, %s18_s10, [#allocation3]  }
  0x11   :  { %107 = dma.done.wait [#allocation3], 256  }
  0x12   :  { %108 = vsyncadd [#allocation3], 4294967040  ;;  %v112_v0 = vmov 0   ;;  %v26_v1 = vld [vmem:[%s157_s0] sm:$0x3]  ;;  %v34_v4 = vlaneseq  ;;  %v25_v10 = vld [vmem:[#allocation2 + $0x8] sm:$0xff] }
  0x13   :  { %62 = vset.pattern.permute.xlu0 %v112_v0  ;;  %v113_v2 = vmov 269488144   ;;  %v24_v9 = vld [vmem:[#allocation2] sm:$0xff]  ;;  %s114_s23 = smov [#allocation5]  }
  0x14   :  { %29 = vperm.xlu0 %62, %v26_v1   ;;  %v32_v3 = vunpack.c.l.s4 %v113_v2  ;;  %v35_v6 = vshrl.u32 %v34_v4, 7  ;;  %s49_s1 = sshll.u32 %s114_s23, 4  ;;  %s50_s1 = int_to_ptr.vmem [resolvable:$true] %s49_s1 }
  0x15   :  { %s85_s24 = scalar_lea.vmem %s50_s1, 256  ;;  %p90_p9 = scmp.lt.s32.totalorder %s50_s1, %s50_s1 }
  0x16   :  { %v33_v5 = vunpack.c.0.s8 %v32_v3  ;;  %p86_p8 = scmp.ne.s32.totalorder %s50_s1, %s85_s24  ;;  %p91_p10 = scmp.lt.s32.totalorder %s85_s24, %s85_s24 }
  0x18   :  { %v36_v7 = vsub.s32 %v33_v5, %v35_v6  ;;  %p92_p11 = por %p91_p10, %p90_p9 }
  0x1a   :  { %p93_p12 = pnand %p92_p11, %p86_p8 }
  0x93   :  { %v30_v8 = vpop.permute.xlu0 %29 }
  0x94   :  { %v37_v11 = vrot.slane %v30_v8, %v36_v7 }
  0x96   :  { %v39_v12 = vmul.f32 %v37_v11, %v24_v9  ;;  %v40_v13 = vmul.f32 %v37_v11, %v25_v10 }
  0x98   :  { %41 = vst [vmem:[#allocation5] sm:$0xff] %v39_v12  ;;  %42 = vst [vmem:[#allocation5 + $0x8] sm:$0xff] %v40_v13 }
  0x99   :  { %96 = shalt.err (!%p93_p12)
}
  0x9a   :  { %s97_s26 = scalar_lea.hbm %s159_s2, 256 }
  0x9b   :  { %p98_p13 = scmp.ne.s32.totalorder %s159_s2, %s97_s26  ;;  %p101_p0 = scmp.lt.u32.totalorder %s97_s26, %s159_s2 }
  0x9d   :  { %p103_p1 = pnand %p101_p0, %p98_p13 }
  0x9f   :  { %106 = shalt.err (!%p103_p1)
}
  0xa0   :  { %52 = dma.vmem_to_hbm [thread:$0]  %s50_s1, 256, %s159_s2, [#allocation4]  }
  0xa1   :  { %109 = dma.done.wait [#allocation4], 256  }
  0xa2   :  { %110 = vsyncadd [#allocation4], 4294967040 }
  0xa3   :  { %56 = vsyncpa [#allocation3], 1 }
  0xa4   :  { %57 = vsyncpa [#allocation4], 1 }

</bundles_post_ra>
